<compile_context>
chip_gen: v6e
topology: v6e:2x2x1
jax: 0.10.0
libtpu: 0.0.40
codegen_flags: <defaults>
</compile_context>

<pallas_src>
import jax
import jax.numpy as jnp
from jax.experimental import pallas as pl
from jax.experimental.pallas import tpu as pltpu


def relation_compare_kernel(q_ref, w1q_ref, cb_ref, w2_ref, b2_ref, out_ref):
    # q_ref:   (tq, F)  f32 query-encoding tile
    # w1q_ref: (F, H)   bf16 query half of the first Linear
    # cb_ref:  (W, H)   class @ W1_class_half + b1 (grid-invariant; f32 or bf16)
    # w2_ref:  (1, H)   f32 second-layer weights laid out as a row
    # b2_ref:  (1,)     f32 scalar, lives in SMEM
    # out_ref: (tq, W)  f32 sigmoid relation scores
    ways = cb_ref.shape[0]

    # Single aligned MXU matmul: bf16 operands, f32 accumulation.
    qh = jnp.dot(q_ref[...].astype(jnp.bfloat16), w1q_ref[...],
                 preferred_element_type=jnp.float32)              # (tq, H) f32
    qh = qh.astype(cb_ref.dtype)        # bf16 hidden on v6e/v7x, f32 on v5e

    cb = cb_ref[...]                    # (W, H) class half (+ b1 folded in)
    w2 = w2_ref[...]                    # (1, H) f32

    # Statically unrolled over the (tiny) ways dimension: each class yields
    # one (tq, 1) logit column; no (tq*ways, H) repeat/tile temporaries.
    cols = []
    for j in range(ways):
        hj = jnp.maximum(qh + cb[j:j + 1, :], 0)                  # (tq, H) ReLU
        # Second Linear (H -> 1): VPU multiply (promotes to f32) + XLU lane
        # reduce — keeps the accumulation in f32.
        cols.append(jnp.sum(hj * w2, axis=-1, keepdims=True))     # (tq, 1) f32

    # Assemble the per-class columns along LANES -> (tq, ways); ways stays on
    # the lane axis, so no sublane->lane relayout precedes the store.
    logits = jnp.concatenate(cols, axis=-1) + b2_ref[0]           # (tq, W) f32
    out_ref[...] = jax.nn.sigmoid(logits).astype(out_ref.dtype)


def _round_up(x, m):
    return (x + m - 1) // m * m


def relation_compare(class_vector, query_encoder, w1, b1, w2, b2, *,
                     q_tile=None, hidden_dtype=None):
    """class_vector: (ways, F); query_encoder: (Q, F);
       w1: (2F, 64); b1: (64,); w2: (64, 1); b2: (1,). Returns (Q, ways)."""
    ways, feat = class_vector.shape
    qsize = query_encoder.shape[0]
    hid = w1.shape[1]

    if hidden_dtype is None:
        # bf16 VALU exists on v6e / v7x; keep the elementwise path in f32 on
        # v5e and older generations (no bf16 VPU/EUP there).
        kind = jax.devices()[0].device_kind.lower()
        bf16_ok = any(tag in kind for tag in ("v6", "v7", "7x"))
        hidden_dtype = jnp.bfloat16 if bf16_ok else jnp.float32

    if q_tile is None:
        # F=32 -> even a 1024-row f32 tile is only ~128 KiB (double-buffered
        # it is far under every generation's scoped VMEM), so tiles are large;
        # but keep >= 2 grid steps so v7x's two TensorCores both get work.
        if qsize <= 8:
            q_tile = qsize
        elif qsize <= 2048:
            q_tile = _round_up(pl.cdiv(qsize, 2), 8)
        else:
            q_tile = 1024
    grid = (pl.cdiv(qsize, q_tile),)
    # NOTE: if qsize % q_tile != 0 the last tile contains out-of-range rows;
    # their (possibly non-finite) sigmoid results are dropped on store.

    # Hoist the grid-invariant class half of the first Linear out of the
    # kernel and fold in b1:  concat([q,c]) @ W1 + b1 == q@W1[:F] + (c@W1[F:] + b1)
    w1_q = w1[:feat, :].astype(jnp.bfloat16)                          # (F, H)
    cb = (class_vector.astype(jnp.float32) @ w1[feat:, :].astype(jnp.float32)
          + b1.astype(jnp.float32)).astype(hidden_dtype)              # (W, H)
    w2_row = w2.reshape(1, hid).astype(jnp.float32)
    b2_s = b2.reshape(1).astype(jnp.float32)

    def full(bs):  # unblocked operand: same block for every grid step
        return pl.BlockSpec(bs, lambda i: (0, 0))

    return pl.pallas_call(
        relation_compare_kernel,
        out_shape=jax.ShapeDtypeStruct((qsize, ways), jnp.float32),
        grid=grid,
        in_specs=[
            pl.BlockSpec((q_tile, feat), lambda i: (i, 0)),      # query tile
            full((feat, hid)),                                   # W1 query half (bf16)
            full((ways, hid)),                                   # class half + b1
            full((1, hid)),                                      # w2 row
            pl.BlockSpec(memory_space=pltpu.MemorySpace.SMEM),   # b2 scalar
        ],
        out_specs=pl.BlockSpec((q_tile, ways), lambda i: (i, 0)),
        compiler_params=pltpu.CompilerParams(
            dimension_semantics=("parallel",)),
    )(query_encoder, w1_q, cb, w2_row, b2_s)


def _reference(class_vector, query_encoder, w1, b1, w2, b2):
    """Pure-JAX (f32) replica of the PyTorch forward for verification."""
    qsize = query_encoder.shape[0]
    ways = class_vector.shape[0]
    exp_c = jnp.broadcast_to(class_vector[None, :, :],
                             (qsize, ways, class_vector.shape[1]))
    exp_q = jnp.broadcast_to(query_encoder[:, None, :],
                             (qsize, ways, query_encoder.shape[1]))
    cat = jnp.concatenate([exp_q, exp_c], axis=2)
    h = jnp.maximum(cat @ w1 + b1, 0.0)
    s = jax.nn.sigmoid(h @ w2 + b2)
    return s[..., 0]


if __name__ == "__main__":
    # Small deterministic setup: ways=4, feature_dim=32, query batch=16.
    ways, feature_dim, query_size, hidden = 4, 32, 16, 64

    key = jax.random.PRNGKey(0)
    k_c, k_q, k_w1, k_b1, k_w2, k_b2 = jax.random.split(key, 6)

    class_vector = jax.random.normal(k_c, (ways, feature_dim), dtype=jnp.float32)
    query_encoder = jax.random.normal(k_q, (query_size, feature_dim), dtype=jnp.float32)

    # Deterministic parameter init (uniform, roughly matching nn.Linear scale).
    lim1 = 1.0 / jnp.sqrt(2.0 * feature_dim)
    w1 = jax.random.uniform(k_w1, (2 * feature_dim, hidden), minval=-lim1, maxval=lim1)
    b1 = jax.random.uniform(k_b1, (hidden,), minval=-lim1, maxval=lim1)
    lim2 = 1.0 / jnp.sqrt(float(hidden))
    w2 = jax.random.uniform(k_w2, (hidden, 1), minval=-lim2, maxval=lim2)
    b2 = jax.random.uniform(k_b2, (1,), minval=-lim2, maxval=lim2)

    # q_tile=8 -> two grid steps over the query dim (exercises the tiled path
    # and matches the ">=2 parallel steps" guidance for v7x's two TensorCores).
    scores = relation_compare(class_vector, query_encoder, w1, b1, w2, b2, q_tile=8)
    scores = jax.block_until_ready(scores)

    ref = _reference(class_vector, query_encoder, w1, b1, w2, b2)
    assert scores.shape == (query_size, ways)
    # bf16 MXU operands (and bf16 hidden on v6e/v7x) -> relaxed tolerance vs
    # the pure-f32 reference; sigmoid saturation keeps the error tiny.
    err = float(jnp.max(jnp.abs(scores - ref)))
    assert jnp.allclose(scores, ref, atol=2e-2, rtol=2e-2), err

    print("KERNEL_OK")
</pallas_src>

<mosaic_0001>
module attributes {stable_mosaic.version = 11 : i64} {
  func.func @relation_compare_kernel(%arg0: i32, %arg1: memref<8x32xf32, #tpu.memory_space<vmem>>, %arg2: memref<32x64xbf16, #tpu.memory_space<vmem>>, %arg3: memref<4x64xf32, #tpu.memory_space<vmem>>, %arg4: memref<1x64xf32, #tpu.memory_space<vmem>>, %arg5: memref<1xf32, #tpu.memory_space<smem>>, %arg6: memref<8x4xf32, #tpu.memory_space<vmem>>) attributes {dimension_semantics = [#tpu.dimension_semantics<parallel>], iteration_bounds = array<i64: 2>, scalar_prefetch = 0 : i64, scratch_operands = 0 : i64, tpu.core_type = #tpu.core_type<tc>, window_params = [{transform_indices = @transform_0, window_bounds = array<i64: 8, 32>}, {pipeline_mode = #tpu.pipeline_mode<synchronous>, transform_indices = @transform_1, window_bounds = array<i64: 32, 64>}, {pipeline_mode = #tpu.pipeline_mode<synchronous>, transform_indices = @transform_2, window_bounds = array<i64: 4, 64>}, {pipeline_mode = #tpu.pipeline_mode<synchronous>, transform_indices = @transform_3, window_bounds = array<i64: 1, 64>}, {transform_indices = @transform_4, window_bounds = array<i64: 1>}, {transform_indices = @transform_5, window_bounds = array<i64: 8, 4>}]} {
    %c0 = arith.constant 0 : index
    %c0_0 = arith.constant 0 : index
    %0 = vector.load %arg1[%c0, %c0_0] : memref<8x32xf32, #tpu.memory_space<vmem>>, vector<8x32xf32>
    %1 = arith.truncf %0 : vector<8x32xf32> to vector<8x32xbf16>
    %c0_1 = arith.constant 0 : index
    %c0_2 = arith.constant 0 : index
    %2 = vector.load %arg2[%c0_1, %c0_2] : memref<32x64xbf16, #tpu.memory_space<vmem>>, vector<32x64xbf16>
    %cst = arith.constant dense<0.000000e+00> : vector<8x64xf32>
    %3 = tpu.matmul %1, %2, %cst {dimension_numbers = #tpu.dot_dimension_numbers<[1], [0], [0], [1], [0, 0, 1, 1], [], []>} : vector<8x32xbf16>, vector<32x64xbf16>, vector<8x64xf32> -> vector<8x64xf32>
    %c0_3 = arith.constant 0 : index
    %c0_4 = arith.constant 0 : index
    %4 = vector.load %arg3[%c0_3, %c0_4] : memref<4x64xf32, #tpu.memory_space<vmem>>, vector<4x64xf32>
    %c0_5 = arith.constant 0 : index
    %c0_6 = arith.constant 0 : index
    %5 = vector.load %arg4[%c0_5, %c0_6] : memref<1x64xf32, #tpu.memory_space<vmem>>, vector<1x64xf32>
    %6 = vector.extract_strided_slice %4 {offsets = [0, 0], sizes = [1, 64], strides = [1, 1]} : vector<4x64xf32> to vector<1x64xf32>
    %7 = vector.broadcast %6 : vector<1x64xf32> to vector<8x64xf32>
    %8 = arith.addf %3, %7 : vector<8x64xf32>
    %cst_7 = arith.constant 0.000000e+00 : f32
    %9 = vector.broadcast %cst_7 : f32 to vector<8x64xf32>
    %10 = arith.maximumf %8, %9 : vector<8x64xf32>
    %11 = vector.broadcast %5 : vector<1x64xf32> to vector<8x64xf32>
    %12 = arith.mulf %10, %11 : vector<8x64xf32>
    %cst_8 = arith.constant dense<0.000000e+00> : vector<8xf32>
    %13 = vector.multi_reduction <add>, %12, %cst_8 [1] : vector<8x64xf32> to vector<8xf32>
    %14 = vector.shape_cast %13 : vector<8xf32> to vector<8x1xf32>
    %15 = vector.extract_strided_slice %4 {offsets = [1, 0], sizes = [1, 64], strides = [1, 1]} : vector<4x64xf32> to vector<1x64xf32>
    %16 = vector.broadcast %15 : vector<1x64xf32> to vector<8x64xf32>
    %17 = arith.addf %3, %16 : vector<8x64xf32>
    %cst_9 = arith.constant 0.000000e+00 : f32
    %18 = vector.broadcast %cst_9 : f32 to vector<8x64xf32>
    %19 = arith.maximumf %17, %18 : vector<8x64xf32>
    %20 = vector.broadcast %5 : vector<1x64xf32> to vector<8x64xf32>
    %21 = arith.mulf %19, %20 : vector<8x64xf32>
    %cst_10 = arith.constant dense<0.000000e+00> : vector<8xf32>
    %22 = vector.multi_reduction <add>, %21, %cst_10 [1] : vector<8x64xf32> to vector<8xf32>
    %23 = vector.shape_cast %22 : vector<8xf32> to vector<8x1xf32>
    %24 = vector.extract_strided_slice %4 {offsets = [2, 0], sizes = [1, 64], strides = [1, 1]} : vector<4x64xf32> to vector<1x64xf32>
    %25 = vector.broadcast %24 : vector<1x64xf32> to vector<8x64xf32>
    %26 = arith.addf %3, %25 : vector<8x64xf32>
    %cst_11 = arith.constant 0.000000e+00 : f32
    %27 = vector.broadcast %cst_11 : f32 to vector<8x64xf32>
    %28 = arith.maximumf %26, %27 : vector<8x64xf32>
    %29 = vector.broadcast %5 : vector<1x64xf32> to vector<8x64xf32>
    %30 = arith.mulf %28, %29 : vector<8x64xf32>
    %cst_12 = arith.constant dense<0.000000e+00> : vector<8xf32>
    %31 = vector.multi_reduction <add>, %30, %cst_12 [1] : vector<8x64xf32> to vector<8xf32>
    %32 = vector.shape_cast %31 : vector<8xf32> to vector<8x1xf32>
    %33 = vector.extract_strided_slice %4 {offsets = [3, 0], sizes = [1, 64], strides = [1, 1]} : vector<4x64xf32> to vector<1x64xf32>
    %34 = vector.broadcast %33 : vector<1x64xf32> to vector<8x64xf32>
    %35 = arith.addf %3, %34 : vector<8x64xf32>
    %cst_13 = arith.constant 0.000000e+00 : f32
    %36 = vector.broadcast %cst_13 : f32 to vector<8x64xf32>
    %37 = arith.maximumf %35, %36 : vector<8x64xf32>
    %38 = vector.broadcast %5 : vector<1x64xf32> to vector<8x64xf32>
    %39 = arith.mulf %37, %38 : vector<8x64xf32>
    %cst_14 = arith.constant dense<0.000000e+00> : vector<8xf32>
    %40 = vector.multi_reduction <add>, %39, %cst_14 [1] : vector<8x64xf32> to vector<8xf32>
    %41 = vector.shape_cast %40 : vector<8xf32> to vector<8x1xf32>
    %42 = tpu.concatenate %14, %23, %32, %41 in 1 : vector<8x1xf32>, vector<8x1xf32>, vector<8x1xf32>, vector<8x1xf32> -> vector<8x4xf32>
    %c0_15 = arith.constant 0 : index
    %43 = memref.load %arg5[%c0_15] : memref<1xf32, #tpu.memory_space<smem>>
    %44 = vector.broadcast %43 : f32 to vector<8x4xf32>
    %45 = arith.addf %42, %44 : vector<8x4xf32>
    %46 = arith.negf %45 : vector<8x4xf32>
    %47 = math.exp %46 : vector<8x4xf32>
    %cst_16 = arith.constant 1.000000e+00 : f32
    %48 = vector.broadcast %cst_16 : f32 to vector<8x4xf32>
    %49 = arith.addf %48, %47 : vector<8x4xf32>
    %50 = arith.divf %48, %49 : vector<8x4xf32>
    %c0_17 = arith.constant 0 : index
    %c0_18 = arith.constant 0 : index
    %51 = vector.load %arg6[%c0_17, %c0_18] : memref<8x4xf32, #tpu.memory_space<vmem>>, vector<8x4xf32>
    tpu.vector_store %arg6[%c0_17, %c0_18], %50 {strides = array<i32>} : memref<8x4xf32, #tpu.memory_space<vmem>>, vector<8x4xf32>,
    return
  }
  func.func @transform_0(%arg0: i32) -> (i32, i32) {
    %c0_i32 = arith.constant 0 : i32
    %c0_i32_0 = arith.constant 0 : i32
    return %arg0, %c0_i32 : i32, i32
  }
  func.func @transform_1(%arg0: i32) -> (i32, i32) {
    %c0_i32 = arith.constant 0 : i32
    %c0_i32_0 = arith.constant 0 : i32
    %c0_i32_1 = arith.constant 0 : i32
    return %c0_i32, %c0_i32_0 : i32, i32
  }
  func.func @transform_2(%arg0: i32) -> (i32, i32) {
    %c0_i32 = arith.constant 0 : i32
    %c0_i32_0 = arith.constant 0 : i32
    %c0_i32_1 = arith.constant 0 : i32
    return %c0_i32, %c0_i32_0 : i32, i32
  }
  func.func @transform_3(%arg0: i32) -> (i32, i32) {
    %c0_i32 = arith.constant 0 : i32
    %c0_i32_0 = arith.constant 0 : i32
    %c0_i32_1 = arith.constant 0 : i32
    return %c0_i32, %c0_i32_0 : i32, i32
  }
  func.func @transform_4(%arg0: i32) -> i32 {
    %c0_i32 = arith.constant 0 : i32
    %c0_i32_0 = arith.constant 0 : i32
    return %c0_i32 : i32
  }
  func.func @transform_5(%arg0: i32) -> (i32, i32) {
    %c0_i32 = arith.constant 0 : i32
    %c0_i32_0 = arith.constant 0 : i32
    return %arg0, %c0_i32 : i32, i32
  }
}

</mosaic_0001>

<bundles_post_ra>
// kernel: tpu_custom_call.1
= control target key start
LH: loop header
LB: loop body
LE: loop exit
PB: predicated region body
PF: predicated region fallthrough
CT: control target
= control target key end

     0   :  { %s804_s0 = inlined_call_operand.hbm [shape: f32[16,32], index: 0, kind: input, shape index: {}]   ;;  %s805_s1 = inlined_call_operand.hbm [shape: bf16[32,64], index: 1, kind: input, shape index: {}]   ;;  %s806_s2 = inlined_call_operand.vmem [shape: f32[4,64], index: 2, kind: input, shape index: {}]   ;;  %s807_s3 = inlined_call_operand.vmem [shape: f32[1,64], index: 3, kind: input, shape index: {}]   ;;  %s808_s4 = inlined_call_operand.<no memory space> [shape: f32[1], index: 4, kind: input, shape index: {}]   ;;  %s809_s5 = inlined_call_operand.vmem [shape: f32[16,4], index: 5, kind: output, shape index: {}]  }
   0x1   :  { %10 = sst [smem:[#allocation2]] %s808_s4 }
   0x2   :  { %11 = vsyncpa [#allocation4], 0 }
   0x3   :  { %13 = vsyncpa [#allocation4 + $0x1], 0 }
   0x4   :  { %14 = vsyncpa [#allocation6], 0  ;;  %s681_s20 = smov 0   ;;  %s683_s21 = smov 0  }
   0x5   :  { %s685_s22 = smov 0   ;;  %s687_s23 = smov 0  }
   0x6 LB: > { %s700_s4 = sadd.s32 4294967295, %s640_s23   ;;  %p40_p0 = scmp.ne.s32.totalorder %s632_s21, %s628_s20  ;;  %s640_s23 = sphi %s687_s23, %s824_s23   ;;  %s636_s22 = sphi %s685_s22, %s823_s22   ;;  %s632_s21 = sphi %s683_s21, %s822_s21   ;;  %s628_s20 = sphi %s681_s20, %s821_s20  }
   0x7   : > { %p810_p1 = scmp.eq.s32.totalorder %s700_s4, 0  ;;  %p461_p2 = scmp.ge.s32.totalorder %s640_s23, 1 }
   0x8   : > { %p161_p3 = scmp.lt.s32.totalorder %s640_s23, 3  ;;  %s642_s26 = smov [#allocation5]  }
   0x9   : > { %p708_p4 = por %p810_p1, %p40_p0  ;;  %s173_s27 = sshll.u32 %s642_s26, 4  ;;  %s174_s27 = int_to_ptr.vmem [resolvable:$true] %s173_s27 }
   0xa   : > { %p712_p5 = pnand %p461_p2, %p161_p3  ;;  %s725_s29 = sadd.s32 1, %s640_s23  }
   0xb   : > { %s813_s24 = scalar_select %p708_p4, 1, 0 }
   0xc   : > { %s814_s25 = scalar_select %p712_p5, 1, 0 }
   0xd   : > { %p494_p6 = pneg %p712_p5  ;;  %s27_s30 = sadd.s32 1, %s636_s22 }
   0xe   : > { %s24_s6 = ssub.s32 %s640_s23, %s725_s29  ;;  %s559_s7 = scalar_lea.vmem %s174_s27, 256 }
   0xf   : > { %p720_p7 = pnand %p494_p6, %p810_p1  ;;  %p560_p9 = scmp.ne.s32.totalorder %s174_s27, %s559_s7 }
  0x10   : > { %p567_p12 = scmp.lt.s32.totalorder %s174_s27, %s174_s27  ;;  %p568_p13 = scmp.lt.s32.totalorder %s559_s7, %s559_s7 }
  0x11   : > { %p550_p8 = pneg %p720_p7 }
  0x12   : > { %p569_p0 = por %p568_p13, %p567_p12 }
  0x13   : > { %p562_p10 = pnand %p560_p9, %p550_p8 }
  0x15   : > { %p563_p11 = pneg %p562_p10 }
  0x17   : > { %p570_p2 = pnand %p569_p0, %p563_p11 }
  0x19   : > { %573 = shalt.err (!%p570_p2)
}
  0x1a   : > { %s643_s8 = smov 64   ;;  %s644_s9 = smov 4  }
  0x1b   : > { %497 = dma.hbm_to_vmem [thread:$0]  (!%p720_p7), %s805_s1, 256, %s174_s27, [#allocation6], %s643_s8, %s643_s8, %s644_s9  }
  0x1c   : > { %p25_p3 = scmp.eq.s32.totalorder %s24_s6, 0  ;;  %p34_p6 = scmp.ne.s32.totalorder %s636_s22, %s632_s21 }
  0x1d   : > { %p35_p8 = scmp.eq.s32.totalorder %s640_s23, 0  ;;  %p503_p9 = scmp.lt.s32.totalorder %s640_s23, 2 }
  0x1e   : > { %s742_s12 = scalar_select %p25_p3, %s636_s22, %s27_s30  }
  0x1f   : > { %p36_p10 = por %p35_p8, %p34_p6  ;;  %s196_s13 = sand.u32 1, %s636_s22  }
  0x20   : > { %s464_s14 = sshll.u32 %s196_s13, 3  ;;  %s465_s15 = sshll.u32 %s640_s23, 7 }
  0x21   : > { %s749_s18 = scalar_lea.hbm %s804_s0, %s465_s15  ;;  %s200_s19 = scalar_lea.vmem [#allocation3], %s464_s14 }
  0x22   : > { %s207_s20 = sshll.u32 %s200_s19, 4  ;;  %p751_p7 = pnand %p503_p9, %p36_p10  ;;  %s208_s20 = int_to_ptr.vmem [resolvable:$true] %s207_s20 }
  0x23   : > { %s197_s27 = scalar_lea.sflag [#allocation4], %s196_s13  ;;  %s574_s28 = scalar_lea.hbm %s749_s18, 128 }
  0x24   : > { %p575_p11 = scmp.ne.s32.totalorder %s749_s18, %s574_s28  ;;  %p576_p12 = pneg %p751_p7 }
  0x25   : > { %s579_s6 = scalar_lea.hbm %s804_s0, 256  ;;  %p580_p2 = scmp.lt.s32.totalorder %s749_s18, %s804_s0 }
  0x26   : > { %p577_p13 = pnand %p576_p12, %p575_p11  ;;  %p581_p3 = scmp.lt.s32.totalorder %s579_s6, %s574_s28 }
  0x28   : > { %p578_p0 = pneg %p577_p13  ;;  %p582_p6 = por %p581_p3, %p580_p2 }
  0x2a   : > { %p583_p8 = pnand %p582_p6, %p578_p0 }
  0x2c   : > { %586 = shalt.err (!%p583_p8)
}
  0x2d   : > { %s587_s9 = scalar_lea.vmem %s208_s20, 128  ;;  %s645_s10 = smov [#allocation3]  }
  0x2e   : > { %p588_p9 = scmp.ne.s32.totalorder %s208_s20, %s587_s9  ;;  %s592_s11 = sshll.u32 %s645_s10, 4  ;;  %s593_s11 = int_to_ptr.vmem [resolvable:$false] %s592_s11 }
  0x2f   : > { %s594_s13 = scalar_lea.vmem %s593_s11, 256  ;;  %p595_p11 = scmp.lt.s32.totalorder %s208_s20, %s593_s11 }
  0x30   : > { %p590_p10 = pnand %p588_p9, %p576_p12  ;;  %p596_p13 = scmp.lt.s32.totalorder %s594_s13, %s587_s9 }
  0x32   : > { %p591_p1 = pneg %p590_p10  ;;  %p597_p4 = por %p596_p13, %p595_p11 }
  0x34   : > { %p598_p5 = pnand %p597_p4, %p591_p1 }
  0x36   : > { %601 = shalt.err (!%p598_p5)
}
  0x37   : > { %501 = dma.hbm_to_vmem [thread:$0]  (!%p751_p7), %s749_s18, 128, %s208_s20, %s197_s27  }
  0x38   : > { %p817_p0 = scmp.ne.s32.totalorder %s814_s25, 0 }
  0x39   : > { %s218_s14 = sand.u32 (!%p817_p0), 1, %s632_s21   ;;  %p818_p12 = scmp.ne.s32.totalorder (!%p817_p0), %s813_s24, 0 }
  0x3a   : > { %216 = sbr.rel (%p817_p0) target bundleno = 456 (0x1c8), region = 40  ;;  %s467_s15 = sshll.u32 (!%p817_p0), %s218_s14, 3 }
  0x3b   : > { %s219_s16 = scalar_lea.sflag (!%p817_p0), [#allocation4], %s218_s14  ;;  %s222_s17 = scalar_lea.vmem (!%p817_p0), [#allocation3], %s467_s15 }
  0x3f   : > { %619 = dma.done.wait (%p818_p12), %s219_s16, 128  }
  0x40   : > { %621 = vsyncadd (%p818_p12), %s219_s16, 4294967168  ;;  %p819_p1 = scmp.eq.s32.totalorder %s700_s4, 0 }
  0x42   : > { %623 = dma.done.wait (%p819_p1), [#allocation6], 256   ;;  %p820_p4 = pmov %p819_p1 }
  0x43   : > { %v646_v0 = vmov 0.0   ;;  %vm647_vm0 = vmmov 0   ;;  %v542_v1 = vld [vmem:[#allocation5 + $0x8] sm:$0xff]   ;;  %v543_v2 = vld [vmem:[#allocation5] sm:$0xff]   ;;  %v257_v3 = vld [vmem:[%s222_s17] sm:$0xff]  ;;  %vm275_vm1 = vcmask 261120   ;;  %v321_v5 = vlaneseq }
  0x44   : > { %625 = vsyncadd (%p820_p4), [#allocation6], 4294967040  ;;  %480 = vmatprep.subr.bf16.mxu0 %v646_v0  ;;  %484 = vmatprep.mubr.msk.bf16.mxu0 %vm647_vm0, %v646_v0  ;;  %v258_v4 = vpack.c.bf16 %v257_v3, %v257_v3  ;;  %v319_v11 = vld [vmem:[%s806_s2] sm:$0xf]  ;;  %vm334_vm2 = vcmask 523264   ;;  %s374_s20 = sld [smem:[#allocation2]] }
  0x45   : > { %481 = vmatpush3.bf16.msra.mxu0 %v542_v1  ;;  %v322_v6 = vshrl.u32 %v321_v5, 7  ;;  %v473_v22 = vld [vmem:[%s807_s3] ss:$0 sm:$0xff]  ;;  %vm368_vm3 = vcmask 7168   ;;  %vm370_vm4 = vcmask 15360   ;;  %vm372_vm5 = vcmask 23552  }
  0x46   : > { %482 = vmatprep.subr.bf16.mxu0 %v646_v0  ;;  %p252_p5 = scmp.lt.s32.totalorder %s700_s4, 1  ;;  %vm383_vm6 = vcmask 31744  }
  0x47   : > { %v350_v7 = vsub.s32 2, %v322_v6  ;;  %v323_v8 = vsub.s32 0, %v322_v6  ;;  %v360_v9 = vsub.s32 3, %v322_v6  ;;  %v340_v10 = vsub.s32 1, %v322_v6 }
  0x48   : > { %s826_s4 = smov (!%p252_p5, %s700_s4), 1 }
  0x49   : > { %483 = vmatpush3.bf16.msra.mxu0 %v543_v2  ;;  %v351_v12 = vrot.slane %v319_v11, %v350_v7  ;;  %v324_v13 = vrot.slane %v319_v11, %v323_v8  ;;  %v361_v14 = vrot.slane %v319_v11, %v360_v9  ;;  %v341_v15 = vrot.slane %v319_v11, %v340_v10  ;;  %s469_s26 = sshll.u32 %s826_s4, 3 }
  0x4a   : > { %v375_v40 = vstv %s374_s20  ;;  %s255_s23 = scalar_lea.vmem %s809_s5, %s469_s26 }
  0x4c   : > { %485 = vmatmul.mubr.msk.bf16.vlgmr.msra.gmra.mxu0 %vm275_vm1, %v258_v4 }
 0x10c   : > { %v313_v16 = vpop.f32.mrf.mxu0 }
 0x10d   : > { %v352_v17 = vadd.f32 %v351_v12, %v313_v16  ;;  %v325_v18 = vadd.f32 %v324_v13, %v313_v16  ;;  %v362_v19 = vadd.f32 %v361_v14, %v313_v16  ;;  %v342_v20 = vadd.f32 %v341_v15, %v313_v16 }
 0x10e   : > { %v486_v21 = vpop.f32.mrf.mxu0 }
 0x10f   : > { %v353_v23 = vmax.f32 %v352_v17, 0.0  ;;  %v326_v24 = vmax.f32 %v325_v18, 0.0  ;;  %v363_v25 = vmax.f32 %v362_v19, 0.0  ;;  %v343_v26 = vmax.f32 %v342_v20, 0.0 }
 0x110   : > { %v316_v27 = vpop.f32.mrf.mxu0 }
 0x111   : > { %v354_v28 = vmul.f32 %v473_v22, %v353_v23  ;;  %v333_v29 = vmul.f32 %v473_v22, %v326_v24  ;;  %v364_v33 = vmul.f32 %v473_v22, %v363_v25  ;;  %v344_v34 = vmul.f32 %v473_v22, %v343_v26 }
 0x112   : > { %v487_v30 = vpop.f32.mrf.mxu0 }
 0x113   : > { %v355_v31 = vsel %vm334_vm2, %v354_v28, 0.0  ;;  %v335_v32 = vsel %vm334_vm2, %v333_v29, 0.0  ;;  %v365_v35 = vsel %vm334_vm2, %v364_v33, 0.0  ;;  %v345_v36 = vsel %vm334_vm2, %v344_v34, 0.0 }
 0x114   : > { %356 = vadd.xlane.f32.xlu1 %v355_v31  ;;  %336 = vadd.xlane.f32.xlu0 %v335_v32 }
 0x118   : > { %366 = vadd.xlane.f32.xlu1 %v365_v35  ;;  %346 = vadd.xlane.f32.xlu0 %v345_v36 }
 0x19d   : > { %v357_v37 = vpop.xlane.xlu1 %356  ;;  %v337_v38 = vpop.xlane.xlu0 %336 }
 0x1a1   : > { %v347_v39 = vpop.xlane.xlu0 %346  ;;  %v367_v42 = vpop.xlane.xlu1 %366 }
 0x1a2   : > { %v369_v41 = vsel %vm368_vm3, %v337_v38, %v347_v39 }
 0x1a3   : > { %v371_v43 = vsel %vm370_vm4, %v369_v41, %v357_v37 }
 0x1a4   : > { %v373_v44 = vsel %vm372_vm5, %v371_v43, %v367_v42 }
 0x1a5   : > { %v376_v45 = vadd.f32 %v375_v40, %v373_v44 }
 0x1a7   : > { %v474_v46 = vmul.f32 -1.442695, %v376_v45 }
 0x1a9   : > { %544 = vpow2.f32 %v474_v46 }
 0x1b6   : > { %v545_v47 = vpop.eup %544 }
 0x1b7   : > { %v380_v48 = vadd.f32 1.0, %v545_v47 }
 0x1b9   : > { %546 = vrcp.f32 %v380_v48 }
 0x1c6   : > { %v547_v49 = vpop.eup %546 }
 0x1c7   : > { %384 = vst.msk [vmem:[%s255_s23] sm:$0xff] %vm383_vm6, %v547_v49 }
 0x1c8 PF: > { %p17_p7 = scmp.ge.s32.totalorder %s725_s29, 4   ;;  %s821_s20 = smov %s632_s21 }
 0x1c9   : > { %s822_s21 = smov %s636_s22  ;;  %s823_s22 = smov %s742_s12 }
 0x1ca   : > { %s824_s23 = smov %s725_s29  ;;  %19 = sbr.rel (!%p17_p7) target bundleno = 6 (0x6), region = 84 }
 0x1cf   :  { %404 = vsyncpa [#allocation4], 1 }
 0x1d0   :  { %406 = vsyncpa [#allocation4 + $0x1], 1 }
 0x1d1   :  { %407 = vsyncpa [#allocation6], 1 }

</bundles_post_ra>
